<compile_context>
chip_gen: v7x
topology: tpu7x:2x2x1
jax: 0.10.0
libtpu: 0.0.40
codegen_flags: <defaults>
</compile_context>

<pallas_src>
import functools

import jax
import jax.numpy as jnp
import numpy as np
from jax import lax
from jax.experimental import pallas as pl
from jax.experimental.pallas import tpu as pltpu


def _pick_tile(n, target, align):
    """Largest tile <= target that divides n and is a multiple of `align`;
    falls back to the full dimension (always a legal block size)."""
    if n <= target:
        return n
    t = (target // align) * align
    while t >= align:
        if n % t == 0:
            return t
        t -= align
    return n


def _recurrent_kernel(U, H, B,
                      ih1_ref, whh1_ref, wih2_ref, whh2_ref, b2_ref,
                      h1_out_ref,
                      h_sc, c_sc, h1_sc, c1_sc):
    """One sentence t: U steps of the 2-layer LSTMCell chain (state in scratch).

    h1_out_ref block is (U, B, H): each step stores one contiguous (B, H) slab
    at major index u (aligned, no masked-offset stores)."""
    t = pl.program_id(0)

    # Zero the recurrent state only once, before the first sentence.
    @pl.when(t == 0)
    def _():
        h_sc[...] = jnp.zeros_like(h_sc)
        c_sc[...] = jnp.zeros_like(c_sc)
        h1_sc[...] = jnp.zeros_like(h1_sc)
        c1_sc[...] = jnp.zeros_like(c1_sc)

    ih1 = ih1_ref[...]      # (B, 4H)  f32 : hoisted LSTM1 input + both biases
    whh1 = whh1_ref[...]    # (H, 4H)  bf16
    wih2 = wih2_ref[...]    # (H, 4H)  bf16
    whh2 = whh2_ref[...]    # (H, 4H)  bf16
    # Hoist the bias broadcast out of the u loop (JAX does not CSE broadcasts).
    b2b = jnp.broadcast_to(b2_ref[...], (B, 4 * H)).astype(jnp.float32)

    # TODO(synk): at production H (multiple of 128) the gate slices below are
    # lane-aligned; for odd H they are sub-lane slices (pad H if this matters).
    def step(u, carry):
        h, c, h1, c1 = carry

        # LSTM1: only the hidden->hidden matmul is recurrent (input is constant).
        g = ih1 + jnp.dot(h.astype(jnp.bfloat16), whh1,
                          preferred_element_type=jnp.float32)
        i1 = jax.nn.sigmoid(g[:, 0 * H:1 * H])
        f1 = jax.nn.sigmoid(g[:, 1 * H:2 * H])
        g1 = jnp.tanh(g[:, 2 * H:3 * H])
        o1 = jax.nn.sigmoid(g[:, 3 * H:4 * H])
        c = f1 * c + i1 * g1
        h = o1 * jnp.tanh(c)

        # LSTM2: two dots (no lane-axis concat on the serial critical path).
        g2 = (b2b
              + jnp.dot(h.astype(jnp.bfloat16), wih2,
                        preferred_element_type=jnp.float32)
              + jnp.dot(h1.astype(jnp.bfloat16), whh2,
                        preferred_element_type=jnp.float32))
        i2 = jax.nn.sigmoid(g2[:, 0 * H:1 * H])
        f2 = jax.nn.sigmoid(g2[:, 1 * H:2 * H])
        gg2 = jnp.tanh(g2[:, 2 * H:3 * H])
        o2 = jax.nn.sigmoid(g2[:, 3 * H:4 * H])
        c1 = f2 * c1 + i2 * gg2
        h1 = o2 * jnp.tanh(c1)

        # Full (B, H) slab store at aligned major offset u; bf16 halves HBM
        # writeback of the intermediate (kernel 2 consumes bf16 anyway).
        h1_out_ref[u] = h1.astype(h1_out_ref.dtype)
        return (h, c, h1, c1)

    carry = (h_sc[...], c_sc[...], h1_sc[...], c1_sc[...])
    # fori_loop keeps live ranges bounded; fully unroll short chains so the
    # LLO scheduler sees across step boundaries.
    carry = lax.fori_loop(0, U, step, carry, unroll=(U <= 8))

    h, c, h1, c1 = carry
    h_sc[...] = h
    c_sc[...] = c
    h1_sc[...] = h1
    c1_sc[...] = c1


def _vocab_proj_kernel(h1_ref, wf_ref, bf_ref, out_ref):
    """Row/V-tiled vocab projection: (tm, H) @ (H, tv) + bias, f32 accumulate."""
    out_ref[...] = (jnp.dot(h1_ref[...], wf_ref[...],
                            preferred_element_type=jnp.float32)
                    + bf_ref[...]).astype(out_ref.dtype)


def sentence_attentional_decoder(sentenc_all, local_features, params, n_words):
    """sentenc_all: (T, B, Cs); local_features: (B, Cl, L). Returns (B, T, U, V)."""
    T, B, Cs = sentenc_all.shape
    _, Cl, L = local_features.shape
    A = params['ws'].shape[0]
    H = params['whh1'].shape[1]
    V = params['wf'].shape[0]
    U = n_words
    # The attention hoist below is exact only for the module as written.
    assert L == A, "attention dim must equal flattened spatial dim (196 in PyTorch)"
    assert params['wa'].shape[0] == 1, "hoist requires softmax over a size-1 dim"

    # ---- hoisted, grid-invariant attention -----------------------------------
    # softmax(a, dim=2) is over a size-1 dim -> weights are identically 1, so the
    # attended feature is exactly sum(local, -1) for every t and is independent
    # of the sentence encodings (kept in the signature for interface fidelity).
    final = jnp.sum(local_features.astype(jnp.float32), axis=-1)          # (B, Cl)

    # LSTM1 input-to-hidden term is constant across t and u.
    ih1 = (final @ params['wih1'].T + params['bih1']
           + params['bhh1']).astype(jnp.float32)                          # (B, 4H)

    # bf16 (in, out)-layout weights for the MXU; biases, state, gate math stay f32.
    whh1_t = params['whh1'].T.astype(jnp.bfloat16)                        # (H, 4H)
    wih2_t = params['wih2'].T.astype(jnp.bfloat16)                        # (H, 4H)
    whh2_t = params['whh2'].T.astype(jnp.bfloat16)                        # (H, 4H)
    b2 = (params['bih2'] + params['bhh2']).astype(jnp.float32)            # (1, 4H)
    wf_t = params['wf'].T.astype(jnp.bfloat16)                            # (H, V)
    bf = params['bf'].astype(jnp.float32)                                 # (1, V)

    inv2 = lambda t: (0, 0)   # grid-invariant 2-D weight blocks

    # ---- kernel 1: sequential recurrent chain (state carried across t) -------
    h1_all = pl.pallas_call(
        functools.partial(_recurrent_kernel, U, H, B),
        out_shape=jax.ShapeDtypeStruct((T, U, B, H), jnp.bfloat16),
        grid_spec=pltpu.PrefetchScalarGridSpec(
            num_scalar_prefetch=0,
            grid=(T,),
            in_specs=[
                pl.BlockSpec((B, 4 * H), inv2),        # ih1
                pl.BlockSpec((H, 4 * H), inv2),        # whh1 (in, out)
                pl.BlockSpec((H, 4 * H), inv2),        # wih2 (in, out)
                pl.BlockSpec((H, 4 * H), inv2),        # whh2 (in, out)
                pl.BlockSpec((1, 4 * H), inv2),        # fused LSTM2 bias
            ],
            out_specs=pl.BlockSpec((None, U, B, H), lambda t: (t, 0, 0, 0)),
            scratch_shapes=[pltpu.VMEM((B, H), jnp.float32)] * 4,
        ),
        compiler_params=pltpu.CompilerParams(
            dimension_semantics=("arbitrary",),        # LSTM state is sequential
            vmem_limit_bytes=32 * 1024 * 1024),
    )(ih1, whh1_t, wih2_t, whh2_t, b2)

    # Permute the SMALL bf16 h1 intermediate to b-major rows so the large logits
    # tensor is produced directly in the final (B, T, U, V) layout (no HBM
    # transpose of the biggest tensor).
    M = B * T * U
    h1_flat = jnp.transpose(h1_all, (2, 0, 1, 3)).reshape(M, H)           # (M, H)

    tm = _pick_tile(M, 256, 8)      # fat MXU M dimension (128-row tiles also fine on v5e)
    tv = _pick_tile(V, 2048, 128)   # V tiling keeps wf tile + out blocks in VMEM budget

    # ---- kernel 2: batched vocab projection, (rows x V) parallel grid --------
    logits = pl.pallas_call(
        _vocab_proj_kernel,
        out_shape=jax.ShapeDtypeStruct((M, V), jnp.float32),
        grid_spec=pltpu.PrefetchScalarGridSpec(
            num_scalar_prefetch=0,
            grid=(M // tm, V // tv),
            in_specs=[
                pl.BlockSpec((tm, H), lambda i, j: (i, 0)),
                pl.BlockSpec((H, tv), lambda i, j: (0, j)),
                pl.BlockSpec((1, tv), lambda i, j: (0, j)),
            ],
            out_specs=pl.BlockSpec((tm, tv), lambda i, j: (i, j)),
        ),
        compiler_params=pltpu.CompilerParams(
            dimension_semantics=("parallel", "parallel"),   # megacore-shardable (v7x)
            vmem_limit_bytes=32 * 1024 * 1024),
    )(h1_flat, wf_t, bf)

    # Rows are (b, t, u)-major => reshape is a free bitcast to the final layout.
    return logits.reshape(B, T, U, V)


# ----------------------------- pure-JAX reference -----------------------------
# Faithful f32 re-implementation of the full PyTorch graph, including the
# (degenerate) visual-attention block driven by the sentence encodings.
def _lstm_cell_ref(x, h, c, wih, whh, bih, bhh):
    H = h.shape[1]
    g = x @ wih.T + bih + h @ whh.T + bhh
    i = jax.nn.sigmoid(g[:, :H])
    f = jax.nn.sigmoid(g[:, H:2 * H])
    gg = jnp.tanh(g[:, 2 * H:3 * H])
    o = jax.nn.sigmoid(g[:, 3 * H:])
    c = f * c + i * gg
    h = o * jnp.tanh(c)
    return h, c


def reference(sentenc_all, local_features, params, n_words):
    T, B, _ = sentenc_all.shape
    H = params['whh1'].shape[1]
    h = jnp.zeros((B, H)); c = jnp.zeros((B, H))
    h1 = jnp.zeros((B, H)); c1 = jnp.zeros((B, H))
    local = local_features
    outs = []
    for t in range(T):
        sent = sentenc_all[t] @ params['ws'].T
        vis = jnp.einsum('bcl,ac->bla', local, params['wv'])
        tot = jnp.tanh(vis + sent[:, :, None])
        a = jnp.einsum('bij,kj->bik', tot, params['wa'])      # (B, A, 1)
        a_soft = jax.nn.softmax(a, axis=2)                    # identically 1
        final = jnp.sum(jnp.transpose(a_soft, (0, 2, 1)) * local, axis=2)
        words = []
        for _ in range(n_words):
            h, c = _lstm_cell_ref(final, h, c, params['wih1'], params['whh1'],
                                  params['bih1'], params['bhh1'])
            h1, c1 = _lstm_cell_ref(h, h1, c1, params['wih2'], params['whh2'],
                                    params['bih2'], params['bhh2'])
            words.append(h1 @ params['wf'].T + params['bf'])
        outs.append(jnp.stack(words, axis=0))                 # (U, B, V)
    out = jnp.stack(outs, axis=0)                             # (T, U, B, V)
    return jnp.transpose(out, (2, 0, 1, 3))


if __name__ == "__main__":
    # Small shapes consistent with the forward semantics:
    # batch=4 (module constant), T sentences, U words per sentence,
    # local CNN features (B, Cl, L) with attention dim A == L (196 in PyTorch),
    # sentence-encoder output dim Cs (2048 in PyTorch), LSTM hidden H, vocab V.
    B, T, U = 4, 2, 3
    Cs, Cl = 256, 128
    A = L = 64
    H, V = 32, 128

    key = jax.random.PRNGKey(0)
    ks = jax.random.split(key, 16)

    # TODO(synk): Resnet50 backbone, the external `Encoder`, and `SentenceG`
    # are pretrained external modules; their outputs (local CNN features and
    # the per-sentence encodings) are modeled as deterministic inputs here.
    local_features = jax.random.normal(ks[0], (B, Cl, L), jnp.float32)
    sentenc_all = jax.random.normal(ks[1], (T, B, Cs), jnp.float32)

    def w(k, shape, fan):
        return jax.random.normal(k, shape, jnp.float32) / jnp.sqrt(jnp.float32(fan))

    params = {
        'ws':   w(ks[2], (A, Cs), Cs),        # nn.Linear(2048, 196, bias=False)
        'wv':   w(ks[3], (A, Cl), Cl),        # nn.Linear(1024, 196, bias=False)
        'wa':   w(ks[4], (1, A), A),          # nn.Linear(196, 1, bias=False)
        'wih1': w(ks[5], (4 * H, Cl), Cl),    # LSTMCell(in_dim=Cl, out_dim=H)
        'whh1': w(ks[6], (4 * H, H), H),
        'bih1': w(ks[7], (1, 4 * H), H),
        'bhh1': w(ks[8], (1, 4 * H), H),
        'wih2': w(ks[9], (4 * H, H), H),      # LSTMCell(out_dim, out_dim)
        'whh2': w(ks[10], (4 * H, H), H),
        'bih2': w(ks[11], (1, 4 * H), H),
        'bhh2': w(ks[12], (1, 4 * H), H),
        'wf':   w(ks[13], (V, H), H),         # nn.Linear(out_dim, vocab_dim)
        'bf':   w(ks[14], (1, V), H),
    }

    decoder = jax.jit(
        lambda s, l, p: sentence_attentional_decoder(s, l, p, U))
    out = decoder(sentenc_all, local_features, params)
    out = jax.block_until_ready(out)
    assert out.shape == (B, T, U, V)

    ref = reference(sentenc_all, local_features, params, U)
    # Tolerance relaxed vs the pure-f32 reference because matmul weights/inputs
    # are cast to bf16 in the kernels (f32 accumulation and f32 LSTM state).
    np.testing.assert_allclose(np.asarray(out), np.asarray(ref),
                               rtol=3e-2, atol=3e-2)
    print("KERNEL_OK")
</pallas_src>

<mosaic_0001>
module attributes {stable_mosaic.version = 11 : i64} {
  func.func @_vocab_proj_kernel(%arg0: i32, %arg1: i32, %arg2: memref<24x32xbf16, #tpu.memory_space<vmem>>, %arg3: memref<32x128xbf16, #tpu.memory_space<vmem>>, %arg4: memref<1x128xf32, #tpu.memory_space<vmem>>, %arg5: memref<24x128xf32, #tpu.memory_space<vmem>>) attributes {dimension_semantics = [#tpu.dimension_semantics<parallel>, #tpu.dimension_semantics<parallel>], iteration_bounds = array<i64: 1, 1>, scalar_prefetch = 0 : i64, scratch_operands = 0 : i64, tpu.core_type = #tpu.core_type<tc>, window_params = [{transform_indices = @transform_0, window_bounds = array<i64: 24, 32>}, {transform_indices = @transform_1, window_bounds = array<i64: 32, 128>}, {transform_indices = @transform_2, window_bounds = array<i64: 1, 128>}, {transform_indices = @transform_3, window_bounds = array<i64: 24, 128>}]} {
    %c0 = arith.constant 0 : index
    %c0_0 = arith.constant 0 : index
    %0 = vector.load %arg2[%c0, %c0_0] : memref<24x32xbf16, #tpu.memory_space<vmem>>, vector<24x32xbf16>
    %c0_1 = arith.constant 0 : index
    %c0_2 = arith.constant 0 : index
    %1 = vector.load %arg3[%c0_1, %c0_2] : memref<32x128xbf16, #tpu.memory_space<vmem>>, vector<32x128xbf16>
    %cst = arith.constant dense<0.000000e+00> : vector<24x128xf32>
    %2 = tpu.matmul %0, %1, %cst {dimension_numbers = #tpu.dot_dimension_numbers<[1], [0], [0], [1], [0, 0, 1, 1], [], []>} : vector<24x32xbf16>, vector<32x128xbf16>, vector<24x128xf32> -> vector<24x128xf32>
    %c0_3 = arith.constant 0 : index
    %c0_4 = arith.constant 0 : index
    %3 = vector.load %arg4[%c0_3, %c0_4] : memref<1x128xf32, #tpu.memory_space<vmem>>, vector<1x128xf32>
    %4 = vector.broadcast %3 : vector<1x128xf32> to vector<24x128xf32>
    %5 = arith.addf %2, %4 : vector<24x128xf32>
    %c0_5 = arith.constant 0 : index
    %c0_6 = arith.constant 0 : index
    %6 = vector.load %arg5[%c0_5, %c0_6] : memref<24x128xf32, #tpu.memory_space<vmem>>, vector<24x128xf32>
    tpu.vector_store %arg5[%c0_5, %c0_6], %5 {strides = array<i32>} : memref<24x128xf32, #tpu.memory_space<vmem>>, vector<24x128xf32>,
    return
  }
  func.func @transform_0(%arg0: i32, %arg1: i32) -> (i32, i32) {
    %c0_i32 = arith.constant 0 : i32
    %c0_i32_0 = arith.constant 0 : i32
    return %arg0, %c0_i32 : i32, i32
  }
  func.func @transform_1(%arg0: i32, %arg1: i32) -> (i32, i32) {
    %c0_i32 = arith.constant 0 : i32
    %c0_i32_0 = arith.constant 0 : i32
    return %c0_i32, %arg1 : i32, i32
  }
  func.func @transform_2(%arg0: i32, %arg1: i32) -> (i32, i32) {
    %c0_i32 = arith.constant 0 : i32
    %c0_i32_0 = arith.constant 0 : i32
    return %c0_i32, %arg1 : i32, i32
  }
  func.func @transform_3(%arg0: i32, %arg1: i32) -> (i32, i32) {
    %c0_i32 = arith.constant 0 : i32
    return %arg0, %arg1 : i32, i32
  }
}

module attributes {stable_mosaic.version = 11 : i64} {
  func.func @_recurrent_kernel(%arg0: i32, %arg1: memref<4x128xf32, #tpu.memory_space<vmem>>, %arg2: memref<32x128xbf16, #tpu.memory_space<vmem>>, %arg3: memref<32x128xbf16, #tpu.memory_space<vmem>>, %arg4: memref<32x128xbf16, #tpu.memory_space<vmem>>, %arg5: memref<1x128xf32, #tpu.memory_space<vmem>>, %arg6: memref<1x3x4x32xbf16, #tpu.memory_space<vmem>>, %arg7: memref<4x32xf32, #tpu.memory_space<vmem>>, %arg8: memref<4x32xf32, #tpu.memory_space<vmem>>, %arg9: memref<4x32xf32, #tpu.memory_space<vmem>>, %arg10: memref<4x32xf32, #tpu.memory_space<vmem>>) attributes {dimension_semantics = [#tpu.dimension_semantics<arbitrary>], iteration_bounds = array<i64: 2>, scalar_prefetch = 0 : i64, scratch_operands = 4 : i64, tpu.core_type = #tpu.core_type<tc>, window_params = [{pipeline_mode = #tpu.pipeline_mode<synchronous>, transform_indices = @transform_0, window_bounds = array<i64: 4, 128>}, {pipeline_mode = #tpu.pipeline_mode<synchronous>, transform_indices = @transform_1, window_bounds = array<i64: 32, 128>}, {pipeline_mode = #tpu.pipeline_mode<synchronous>, transform_indices = @transform_2, window_bounds = array<i64: 32, 128>}, {pipeline_mode = #tpu.pipeline_mode<synchronous>, transform_indices = @transform_3, window_bounds = array<i64: 32, 128>}, {pipeline_mode = #tpu.pipeline_mode<synchronous>, transform_indices = @transform_4, window_bounds = array<i64: 1, 128>}, {transform_indices = @transform_5, window_bounds = array<i64: 1, 3, 4, 32>}]} {
    %c0_i32 = arith.constant 0 : i32
    %0 = arith.cmpi eq, %arg0, %c0_i32 : i32
    %1 = arith.extui %0 : i1 to i32
    %c0_i32_0 = arith.constant 0 : i32
    %2 = arith.cmpi ne, %1, %c0_i32_0 : i32
    scf.if %2 {
      %cst_62 = arith.constant 0.000000e+00 : f32
      %210 = vector.broadcast %cst_62 : f32 to vector<4x32xf32>
      %c0_63 = arith.constant 0 : index
      %c0_64 = arith.constant 0 : index
      %211 = vector.load %arg7[%c0_63, %c0_64] : memref<4x32xf32, #tpu.memory_space<vmem>>, vector<4x32xf32>
      tpu.vector_store %arg7[%c0_63, %c0_64], %210 {strides = array<i32>} : memref<4x32xf32, #tpu.memory_space<vmem>>, vector<4x32xf32>,
      %cst_65 = arith.constant 0.000000e+00 : f32
      %212 = vector.broadcast %cst_65 : f32 to vector<4x32xf32>
      %c0_66 = arith.constant 0 : index
      %c0_67 = arith.constant 0 : index
      %213 = vector.load %arg8[%c0_66, %c0_67] : memref<4x32xf32, #tpu.memory_space<vmem>>, vector<4x32xf32>
      tpu.vector_store %arg8[%c0_66, %c0_67], %212 {strides = array<i32>} : memref<4x32xf32, #tpu.memory_space<vmem>>, vector<4x32xf32>,
      %cst_68 = arith.constant 0.000000e+00 : f32
      %214 = vector.broadcast %cst_68 : f32 to vector<4x32xf32>
      %c0_69 = arith.constant 0 : index
      %c0_70 = arith.constant 0 : index
      %215 = vector.load %arg9[%c0_69, %c0_70] : memref<4x32xf32, #tpu.memory_space<vmem>>, vector<4x32xf32>
      tpu.vector_store %arg9[%c0_69, %c0_70], %214 {strides = array<i32>} : memref<4x32xf32, #tpu.memory_space<vmem>>, vector<4x32xf32>,
      %cst_71 = arith.constant 0.000000e+00 : f32
      %216 = vector.broadcast %cst_71 : f32 to vector<4x32xf32>
      %c0_72 = arith.constant 0 : index
      %c0_73 = arith.constant 0 : index
      %217 = vector.load %arg10[%c0_72, %c0_73] : memref<4x32xf32, #tpu.memory_space<vmem>>, vector<4x32xf32>
      tpu.vector_store %arg10[%c0_72, %c0_73], %216 {strides = array<i32>} : memref<4x32xf32, #tpu.memory_space<vmem>>, vector<4x32xf32>,
    } else {
    }
    %c0 = arith.constant 0 : index
    %c0_1 = arith.constant 0 : index
    %3 = vector.load %arg1[%c0, %c0_1] : memref<4x128xf32, #tpu.memory_space<vmem>>, vector<4x128xf32>
    %c0_2 = arith.constant 0 : index
    %c0_3 = arith.constant 0 : index
    %4 = vector.load %arg2[%c0_2, %c0_3] : memref<32x128xbf16, #tpu.memory_space<vmem>>, vector<32x128xbf16>
    %c0_4 = arith.constant 0 : index
    %c0_5 = arith.constant 0 : index
    %5 = vector.load %arg3[%c0_4, %c0_5] : memref<32x128xbf16, #tpu.memory_space<vmem>>, vector<32x128xbf16>
    %c0_6 = arith.constant 0 : index
    %c0_7 = arith.constant 0 : index
    %6 = vector.load %arg4[%c0_6, %c0_7] : memref<32x128xbf16, #tpu.memory_space<vmem>>, vector<32x128xbf16>
    %c0_8 = arith.constant 0 : index
    %c0_9 = arith.constant 0 : index
    %7 = vector.load %arg5[%c0_8, %c0_9] : memref<1x128xf32, #tpu.memory_space<vmem>>, vector<1x128xf32>
    %8 = vector.shape_cast %7 : vector<1x128xf32> to vector<1x128xf32>
    %9 = vector.broadcast %8 : vector<1x128xf32> to vector<4x128xf32>
    %c0_10 = arith.constant 0 : index
    %c0_11 = arith.constant 0 : index
    %10 = vector.load %arg7[%c0_10, %c0_11] : memref<4x32xf32, #tpu.memory_space<vmem>>, vector<4x32xf32>
    %c0_12 = arith.constant 0 : index
    %c0_13 = arith.constant 0 : index
    %11 = vector.load %arg8[%c0_12, %c0_13] : memref<4x32xf32, #tpu.memory_space<vmem>>, vector<4x32xf32>
    %c0_14 = arith.constant 0 : index
    %c0_15 = arith.constant 0 : index
    %12 = vector.load %arg9[%c0_14, %c0_15] : memref<4x32xf32, #tpu.memory_space<vmem>>, vector<4x32xf32>
    %c0_16 = arith.constant 0 : index
    %c0_17 = arith.constant 0 : index
    %13 = vector.load %arg10[%c0_16, %c0_17] : memref<4x32xf32, #tpu.memory_space<vmem>>, vector<4x32xf32>
    %c0_i32_18 = arith.constant 0 : i32
    %14 = arith.truncf %10 : vector<4x32xf32> to vector<4x32xbf16>
    %cst = arith.constant dense<0.000000e+00> : vector<4x128xf32>
    %15 = tpu.matmul %14, %4, %cst {dimension_numbers = #tpu.dot_dimension_numbers<[1], [0], [0], [1], [0, 0, 1, 1], [], []>} : vector<4x32xbf16>, vector<32x128xbf16>, vector<4x128xf32> -> vector<4x128xf32>
    %16 = arith.addf %3, %15 : vector<4x128xf32>
    %17 = vector.extract_strided_slice %16 {offsets = [0, 0], sizes = [4, 32], strides = [1, 1]} : vector<4x128xf32> to vector<4x32xf32>
    %18 = arith.negf %17 : vector<4x32xf32>
    %19 = math.exp %18 : vector<4x32xf32>
    %cst_19 = arith.constant 1.000000e+00 : f32
    %20 = vector.broadcast %cst_19 : f32 to vector<4x32xf32>
    %21 = arith.addf %20, %19 : vector<4x32xf32>
    %22 = arith.divf %20, %21 : vector<4x32xf32>
    %23 = vector.extract_strided_slice %16 {offsets = [0, 32], sizes = [4, 32], strides = [1, 1]} : vector<4x128xf32> to vector<4x32xf32>
    %24 = arith.negf %23 : vector<4x32xf32>
    %25 = math.exp %24 : vector<4x32xf32>
    %cst_20 = arith.constant 1.000000e+00 : f32
    %26 = vector.broadcast %cst_20 : f32 to vector<4x32xf32>
    %27 = arith.addf %26, %25 : vector<4x32xf32>
    %28 = arith.divf %26, %27 : vector<4x32xf32>
    %29 = vector.extract_strided_slice %16 {offsets = [0, 64], sizes = [4, 32], strides = [1, 1]} : vector<4x128xf32> to vector<4x32xf32>
    %30 = math.tanh %29 : vector<4x32xf32>
    %31 = vector.extract_strided_slice %16 {offsets = [0, 96], sizes = [4, 32], strides = [1, 1]} : vector<4x128xf32> to vector<4x32xf32>
    %32 = arith.negf %31 : vector<4x32xf32>
    %33 = math.exp %32 : vector<4x32xf32>
    %cst_21 = arith.constant 1.000000e+00 : f32
    %34 = vector.broadcast %cst_21 : f32 to vector<4x32xf32>
    %35 = arith.addf %34, %33 : vector<4x32xf32>
    %36 = arith.divf %34, %35 : vector<4x32xf32>
    %37 = arith.mulf %28, %11 : vector<4x32xf32>
    %38 = arith.mulf %22, %30 : vector<4x32xf32>
    %39 = arith.addf %37, %38 : vector<4x32xf32>
    %40 = math.tanh %39 : vector<4x32xf32>
    %41 = arith.mulf %36, %40 : vector<4x32xf32>
    %42 = arith.truncf %41 : vector<4x32xf32> to vector<4x32xbf16>
    %cst_22 = arith.constant dense<0.000000e+00> : vector<4x128xf32>
    %43 = tpu.matmul %42, %5, %cst_22 {dimension_numbers = #tpu.dot_dimension_numbers<[1], [0], [0], [1], [0, 0, 1, 1], [], []>} : vector<4x32xbf16>, vector<32x128xbf16>, vector<4x128xf32> -> vector<4x128xf32>
    %44 = arith.addf %9, %43 : vector<4x128xf32>
    %45 = arith.truncf %12 : vector<4x32xf32> to vector<4x32xbf16>
    %cst_23 = arith.constant dense<0.000000e+00> : vector<4x128xf32>
    %46 = tpu.matmul %45, %6, %cst_23 {dimension_numbers = #tpu.dot_dimension_numbers<[1], [0], [0], [1], [0, 0, 1, 1], [], []>} : vector<4x32xbf16>, vector<32x128xbf16>, vector<4x128xf32> -> vector<4x128xf32>
    %47 = arith.addf %44, %46 : vector<4x128xf32>
    %48 = vector.extract_strided_slice %47 {offsets = [0, 0], sizes = [4, 32], strides = [1, 1]} : vector<4x128xf32> to vector<4x32xf32>
    %49 = arith.negf %48 : vector<4x32xf32>
    %50 = math.exp %49 : vector<4x32xf32>
    %cst_24 = arith.constant 1.000000e+00 : f32
    %51 = vector.broadcast %cst_24 : f32 to vector<4x32xf32>
    %52 = arith.addf %51, %50 : vector<4x32xf32>
    %53 = arith.divf %51, %52 : vector<4x32xf32>
    %54 = vector.extract_strided_slice %47 {offsets = [0, 32], sizes = [4, 32], strides = [1, 1]} : vector<4x128xf32> to vector<4x32xf32>
    %55 = arith.negf %54 : vector<4x32xf32>
    %56 = math.exp %55 : vector<4x32xf32>
    %cst_25 = arith.constant 1.000000e+00 : f32
    %57 = vector.broadcast %cst_25 : f32 to vector<4x32xf32>
    %58 = arith.addf %57, %56 : vector<4x32xf32>
    %59 = arith.divf %57, %58 : vector<4x32xf32>
    %60 = vector.extract_strided_slice %47 {offsets = [0, 64], sizes = [4, 32], strides = [1, 1]} : vector<4x128xf32> to vector<4x32xf32>
    %61 = math.tanh %60 : vector<4x32xf32>
    %62 = vector.extract_strided_slice %47 {offsets = [0, 96], sizes = [4, 32], strides = [1, 1]} : vector<4x128xf32> to vector<4x32xf32>
    %63 = arith.negf %62 : vector<4x32xf32>
    %64 = math.exp %63 : vector<4x32xf32>
    %cst_26 = arith.constant 1.000000e+00 : f32
    %65 = vector.broadcast %cst_26 : f32 to vector<4x32xf32>
    %66 = arith.addf %65, %64 : vector<4x32xf32>
    %67 = arith.divf %65, %66 : vector<4x32xf32>
    %68 = arith.mulf %59, %13 : vector<4x32xf32>
    %69 = arith.mulf %53, %61 : vector<4x32xf32>
    %70 = arith.addf %68, %69 : vector<4x32xf32>
    %71 = math.tanh %70 : vector<4x32xf32>
    %72 = arith.mulf %67, %71 : vector<4x32xf32>
    %73 = arith.truncf %72 : vector<4x32xf32> to vector<4x32xbf16>
    %c0_27 = arith.constant 0 : index
    %74 = arith.index_cast %c0_i32_18 : i32 to index
    %c0_28 = arith.constant 0 : index
    %c0_29 = arith.constant 0 : index
    %75 = vector.load %arg6[%c0_27, %74, %c0_28, %c0_29] : memref<1x3x4x32xbf16, #tpu.memory_space<vmem>>, vector<1x1x4x32xbf16>
    %76 = vector.shape_cast %75 : vector<1x1x4x32xbf16> to vector<4x32xbf16>
    %77 = vector.shape_cast %73 : vector<4x32xbf16> to vector<1x1x4x32xbf16>
    tpu.vector_store %arg6[%c0_27, %74, %c0_28, %c0_29], %77 {strides = array<i32>} : memref<1x3x4x32xbf16, #tpu.memory_space<vmem>>, vector<1x1x4x32xbf16>,
    %c1_i32 = arith.constant 1 : i32
    %78 = arith.truncf %41 : vector<4x32xf32> to vector<4x32xbf16>
    %cst_30 = arith.constant dense<0.000000e+00> : vector<4x128xf32>
    %79 = tpu.matmul %78, %4, %cst_30 {dimension_numbers = #tpu.dot_dimension_numbers<[1], [0], [0], [1], [0, 0, 1, 1], [], []>} : vector<4x32xbf16>, vector<32x128xbf16>, vector<4x128xf32> -> vector<4x128xf32>
    %80 = arith.addf %3, %79 : vector<4x128xf32>
    %81 = vector.extract_strided_slice %80 {offsets = [0, 0], sizes = [4, 32], strides = [1, 1]} : vector<4x128xf32> to vector<4x32xf32>
    %82 = arith.negf %81 : vector<4x32xf32>
    %83 = math.exp %82 : vector<4x32xf32>
    %cst_31 = arith.constant 1.000000e+00 : f32
    %84 = vector.broadcast %cst_31 : f32 to vector<4x32xf32>
    %85 = arith.addf %84, %83 : vector<4x32xf32>
    %86 = arith.divf %84, %85 : vector<4x32xf32>
    %87 = vector.extract_strided_slice %80 {offsets = [0, 32], sizes = [4, 32], strides = [1, 1]} : vector<4x128xf32> to vector<4x32xf32>
    %88 = arith.negf %87 : vector<4x32xf32>
    %89 = math.exp %88 : vector<4x32xf32>
    %cst_32 = arith.constant 1.000000e+00 : f32
    %90 = vector.broadcast %cst_32 : f32 to vector<4x32xf32>
    %91 = arith.addf %90, %89 : vector<4x32xf32>
    %92 = arith.divf %90, %91 : vector<4x32xf32>
    %93 = vector.extract_strided_slice %80 {offsets = [0, 64], sizes = [4, 32], strides = [1, 1]} : vector<4x128xf32> to vector<4x32xf32>
    %94 = math.tanh %93 : vector<4x32xf32>
    %95 = vector.extract_strided_slice %80 {offsets = [0, 96], sizes = [4, 32], strides = [1, 1]} : vector<4x128xf32> to vector<4x32xf32>
    %96 = arith.negf %95 : vector<4x32xf32>
    %97 = math.exp %96 : vector<4x32xf32>
    %cst_33 = arith.constant 1.000000e+00 : f32
    %98 = vector.broadcast %cst_33 : f32 to vector<4x32xf32>
    %99 = arith.addf %98, %97 : vector<4x32xf32>
    %100 = arith.divf %98, %99 : vector<4x32xf32>
    %101 = arith.mulf %92, %39 : vector<4x32xf32>
    %102 = arith.mulf %86, %94 : vector<4x32xf32>
    %103 = arith.addf %101, %102 : vector<4x32xf32>
    %104 = math.tanh %103 : vector<4x32xf32>
    %105 = arith.mulf %100, %104 : vector<4x32xf32>
    %106 = arith.truncf %105 : vector<4x32xf32> to vector<4x32xbf16>
    %cst_34 = arith.constant dense<0.000000e+00> : vector<4x128xf32>
    %107 = tpu.matmul %106, %5, %cst_34 {dimension_numbers = #tpu.dot_dimension_numbers<[1], [0], [0], [1], [0, 0, 1, 1], [], []>} : vector<4x32xbf16>, vector<32x128xbf16>, vector<4x128xf32> -> vector<4x128xf32>
    %108 = arith.addf %9, %107 : vector<4x128xf32>
    %109 = arith.truncf %72 : vector<4x32xf32> to vector<4x32xbf16>
    %cst_35 = arith.constant dense<0.000000e+00> : vector<4x128xf32>
    %110 = tpu.matmul %109, %6, %cst_35 {dimension_numbers = #tpu.dot_dimension_numbers<[1], [0], [0], [1], [0, 0, 1, 1], [], []>} : vector<4x32xbf16>, vector<32x128xbf16>, vector<4x128xf32> -> vector<4x128xf32>
    %111 = arith.addf %108, %110 : vector<4x128xf32>
    %112 = vector.extract_strided_slice %111 {offsets = [0, 0], sizes = [4, 32], strides = [1, 1]} : vector<4x128xf32> to vector<4x32xf32>
    %113 = arith.negf %112 : vector<4x32xf32>
    %114 = math.exp %113 : vector<4x32xf32>
    %cst_36 = arith.constant 1.000000e+00 : f32
    %115 = vector.broadcast %cst_36 : f32 to vector<4x32xf32>
    %116 = arith.addf %115, %114 : vector<4x32xf32>
    %117 = arith.divf %115, %116 : vector<4x32xf32>
    %118 = vector.extract_strided_slice %111 {offsets = [0, 32], sizes = [4, 32], strides = [1, 1]} : vector<4x128xf32> to vector<4x32xf32>
    %119 = arith.negf %118 : vector<4x32xf32>
    %120 = math.exp %119 : vector<4x32xf32>
    %cst_37 = arith.constant 1.000000e+00 : f32
    %121 = vector.broadcast %cst_37 : f32 to vector<4x32xf32>
    %122 = arith.addf %121, %120 : vector<4x32xf32>
    %123 = arith.divf %121, %122 : vector<4x32xf32>
    %124 = vector.extract_strided_slice %111 {offsets = [0, 64], sizes = [4, 32], strides = [1, 1]} : vector<4x128xf32> to vector<4x32xf32>
    %125 = math.tanh %124 : vector<4x32xf32>
    %126 = vector.extract_strided_slice %111 {offsets = [0, 96], sizes = [4, 32], strides = [1, 1]} : vector<4x128xf32> to vector<4x32xf32>
    %127 = arith.negf %126 : vector<4x32xf32>
    %128 = math.exp %127 : vector<4x32xf32>
    %cst_38 = arith.constant 1.000000e+00 : f32
    %129 = vector.broadcast %cst_38 : f32 to vector<4x32xf32>
    %130 = arith.addf %129, %128 : vector<4x32xf32>
    %131 = arith.divf %129, %130 : vector<4x32xf32>
    %132 = arith.mulf %123, %70 : vector<4x32xf32>
    %133 = arith.mulf %117, %125 : vector<4x32xf32>
    %134 = arith.addf %132, %133 : vector<4x32xf32>
    %135 = math.tanh %134 : vector<4x32xf32>
    %136 = arith.mulf %131, %135 : vector<4x32xf32>
    %137 = arith.truncf %136 : vector<4x32xf32> to vector<4x32xbf16>
    %c0_39 = arith.constant 0 : index
    %138 = arith.index_cast %c1_i32 : i32 to index
    %c0_40 = arith.constant 0 : index
    %c0_41 = arith.constant 0 : index
    %139 = vector.load %arg6[%c0_39, %138, %c0_40, %c0_41] : memref<1x3x4x32xbf16, #tpu.memory_space<vmem>>, vector<1x1x4x32xbf16>
    %140 = vector.shape_cast %139 : vector<1x1x4x32xbf16> to vector<4x32xbf16>
    %141 = vector.shape_cast %137 : vector<4x32xbf16> to vector<1x1x4x32xbf16>
    tpu.vector_store %arg6[%c0_39, %138, %c0_40, %c0_41], %141 {strides = array<i32>} : memref<1x3x4x32xbf16, #tpu.memory_space<vmem>>, vector<1x1x4x32xbf16>,
    %c2_i32 = arith.constant 2 : i32
    %142 = arith.truncf %105 : vector<4x32xf32> to vector<4x32xbf16>
    %cst_42 = arith.constant dense<0.000000e+00> : vector<4x128xf32>
    %143 = tpu.matmul %142, %4, %cst_42 {dimension_numbers = #tpu.dot_dimension_numbers<[1], [0], [0], [1], [0, 0, 1, 1], [], []>} : vector<4x32xbf16>, vector<32x128xbf16>, vector<4x128xf32> -> vector<4x128xf32>
    %144 = arith.addf %3, %143 : vector<4x128xf32>
    %145 = vector.extract_strided_slice %144 {offsets = [0, 0], sizes = [4, 32], strides = [1, 1]} : vector<4x128xf32> to vector<4x32xf32>
    %146 = arith.negf %145 : vector<4x32xf32>
    %147 = math.exp %146 : vector<4x32xf32>
    %cst_43 = arith.constant 1.000000e+00 : f32
    %148 = vector.broadcast %cst_43 : f32 to vector<4x32xf32>
    %149 = arith.addf %148, %147 : vector<4x32xf32>
    %150 = arith.divf %148, %149 : vector<4x32xf32>
    %151 = vector.extract_strided_slice %144 {offsets = [0, 32], sizes = [4, 32], strides = [1, 1]} : vector<4x128xf32> to vector<4x32xf32>
    %152 = arith.negf %151 : vector<4x32xf32>
    %153 = math.exp %152 : vector<4x32xf32>
    %cst_44 = arith.constant 1.000000e+00 : f32
    %154 = vector.broadcast %cst_44 : f32 to vector<4x32xf32>
    %155 = arith.addf %154, %153 : vector<4x32xf32>
    %156 = arith.divf %154, %155 : vector<4x32xf32>
    %157 = vector.extract_strided_slice %144 {offsets = [0, 64], sizes = [4, 32], strides = [1, 1]} : vector<4x128xf32> to vector<4x32xf32>
    %158 = math.tanh %157 : vector<4x32xf32>
    %159 = vector.extract_strided_slice %144 {offsets = [0, 96], sizes = [4, 32], strides = [1, 1]} : vector<4x128xf32> to vector<4x32xf32>
    %160 = arith.negf %159 : vector<4x32xf32>
    %161 = math.exp %160 : vector<4x32xf32>
    %cst_45 = arith.constant 1.000000e+00 : f32
    %162 = vector.broadcast %cst_45 : f32 to vector<4x32xf32>
    %163 = arith.addf %162, %161 : vector<4x32xf32>
    %164 = arith.divf %162, %163 : vector<4x32xf32>
    %165 = arith.mulf %156, %103 : vector<4x32xf32>
    %166 = arith.mulf %150, %158 : vector<4x32xf32>
    %167 = arith.addf %165, %166 : vector<4x32xf32>
    %168 = math.tanh %167 : vector<4x32xf32>
    %169 = arith.mulf %164, %168 : vector<4x32xf32>
    %170 = arith.truncf %169 : vector<4x32xf32> to vector<4x32xbf16>
    %cst_46 = arith.constant dense<0.000000e+00> : vector<4x128xf32>
    %171 = tpu.matmul %170, %5, %cst_46 {dimension_numbers = #tpu.dot_dimension_numbers<[1], [0], [0], [1], [0, 0, 1, 1], [], []>} : vector<4x32xbf16>, vector<32x128xbf16>, vector<4x128xf32> -> vector<4x128xf32>
    %172 = arith.addf %9, %171 : vector<4x128xf32>
    %173 = arith.truncf %136 : vector<4x32xf32> to vector<4x32xbf16>
    %cst_47 = arith.constant dense<0.000000e+00> : vector<4x128xf32>
    %174 = tpu.matmul %173, %6, %cst_47 {dimension_numbers = #tpu.dot_dimension_numbers<[1], [0], [0], [1], [0, 0, 1, 1], [], []>} : vector<4x32xbf16>, vector<32x128xbf16>, vector<4x128xf32> -> vector<4x128xf32>
    %175 = arith.addf %172, %174 : vector<4x128xf32>
    %176 = vector.extract_strided_slice %175 {offsets = [0, 0], sizes = [4, 32], strides = [1, 1]} : vector<4x128xf32> to vector<4x32xf32>
    %177 = arith.negf %176 : vector<4x32xf32>
    %178 = math.exp %177 : vector<4x32xf32>
    %cst_48 = arith.constant 1.000000e+00 : f32
    %179 = vector.broadcast %cst_48 : f32 to vector<4x32xf32>
    %180 = arith.addf %179, %178 : vector<4x32xf32>
    %181 = arith.divf %179, %180 : vector<4x32xf32>
    %182 = vector.extract_strided_slice %175 {offsets = [0, 32], sizes = [4, 32], strides = [1, 1]} : vector<4x128xf32> to vector<4x32xf32>
    %183 = arith.negf %182 : vector<4x32xf32>
    %184 = math.exp %183 : vector<4x32xf32>
    %cst_49 = arith.constant 1.000000e+00 : f32
    %185 = vector.broadcast %cst_49 : f32 to vector<4x32xf32>
    %186 = arith.addf %185, %184 : vector<4x32xf32>
    %187 = arith.divf %185, %186 : vector<4x32xf32>
    %188 = vector.extract_strided_slice %175 {offsets = [0, 64], sizes = [4, 32], strides = [1, 1]} : vector<4x128xf32> to vector<4x32xf32>
    %189 = math.tanh %188 : vector<4x32xf32>
    %190 = vector.extract_strided_slice %175 {offsets = [0, 96], sizes = [4, 32], strides = [1, 1]} : vector<4x128xf32> to vector<4x32xf32>
    %191 = arith.negf %190 : vector<4x32xf32>
    %192 = math.exp %191 : vector<4x32xf32>
    %cst_50 = arith.constant 1.000000e+00 : f32
    %193 = vector.broadcast %cst_50 : f32 to vector<4x32xf32>
    %194 = arith.addf %193, %192 : vector<4x32xf32>
    %195 = arith.divf %193, %194 : vector<4x32xf32>
    %196 = arith.mulf %187, %134 : vector<4x32xf32>
    %197 = arith.mulf %181, %189 : vector<4x32xf32>
    %198 = arith.addf %196, %197 : vector<4x32xf32>
    %199 = math.tanh %198 : vector<4x32xf32>
    %200 = arith.mulf %195, %199 : vector<4x32xf32>
    %201 = arith.truncf %200 : vector<4x32xf32> to vector<4x32xbf16>
    %c0_51 = arith.constant 0 : index
    %202 = arith.index_cast %c2_i32 : i32 to index
    %c0_52 = arith.constant 0 : index
    %c0_53 = arith.constant 0 : index
    %203 = vector.load %arg6[%c0_51, %202, %c0_52, %c0_53] : memref<1x3x4x32xbf16, #tpu.memory_space<vmem>>, vector<1x1x4x32xbf16>
    %204 = vector.shape_cast %203 : vector<1x1x4x32xbf16> to vector<4x32xbf16>
    %205 = vector.shape_cast %201 : vector<4x32xbf16> to vector<1x1x4x32xbf16>
    tpu.vector_store %arg6[%c0_51, %202, %c0_52, %c0_53], %205 {strides = array<i32>} : memref<1x3x4x32xbf16, #tpu.memory_space<vmem>>, vector<1x1x4x32xbf16>,
    %c3_i32 = arith.constant 3 : i32
    %c0_54 = arith.constant 0 : index
    %c0_55 = arith.constant 0 : index
    %206 = vector.load %arg7[%c0_54, %c0_55] : memref<4x32xf32, #tpu.memory_space<vmem>>, vector<4x32xf32>
    tpu.vector_store %arg7[%c0_54, %c0_55], %169 {strides = array<i32>} : memref<4x32xf32, #tpu.memory_space<vmem>>, vector<4x32xf32>,
    %c0_56 = arith.constant 0 : index
    %c0_57 = arith.constant 0 : index
    %207 = vector.load %arg8[%c0_56, %c0_57] : memref<4x32xf32, #tpu.memory_space<vmem>>, vector<4x32xf32>
    tpu.vector_store %arg8[%c0_56, %c0_57], %167 {strides = array<i32>} : memref<4x32xf32, #tpu.memory_space<vmem>>, vector<4x32xf32>,
    %c0_58 = arith.constant 0 : index
    %c0_59 = arith.constant 0 : index
    %208 = vector.load %arg9[%c0_58, %c0_59] : memref<4x32xf32, #tpu.memory_space<vmem>>, vector<4x32xf32>
    tpu.vector_store %arg9[%c0_58, %c0_59], %200 {strides = array<i32>} : memref<4x32xf32, #tpu.memory_space<vmem>>, vector<4x32xf32>,
    %c0_60 = arith.constant 0 : index
    %c0_61 = arith.constant 0 : index
    %209 = vector.load %arg10[%c0_60, %c0_61] : memref<4x32xf32, #tpu.memory_space<vmem>>, vector<4x32xf32>
    tpu.vector_store %arg10[%c0_60, %c0_61], %198 {strides = array<i32>} : memref<4x32xf32, #tpu.memory_space<vmem>>, vector<4x32xf32>,
    return
  }
  func.func @transform_0(%arg0: i32) -> (i32, i32) {
    %c0_i32 = arith.constant 0 : i32
    %c0_i32_0 = arith.constant 0 : i32
    %c0_i32_1 = arith.constant 0 : i32
    return %c0_i32, %c0_i32_0 : i32, i32
  }
  func.func @transform_1(%arg0: i32) -> (i32, i32) {
    %c0_i32 = arith.constant 0 : i32
    %c0_i32_0 = arith.constant 0 : i32
    %c0_i32_1 = arith.constant 0 : i32
    return %c0_i32, %c0_i32_0 : i32, i32
  }
  func.func @transform_2(%arg0: i32) -> (i32, i32) {
    %c0_i32 = arith.constant 0 : i32
    %c0_i32_0 = arith.constant 0 : i32
    %c0_i32_1 = arith.constant 0 : i32
    return %c0_i32, %c0_i32_0 : i32, i32
  }
  func.func @transform_3(%arg0: i32) -> (i32, i32) {
    %c0_i32 = arith.constant 0 : i32
    %c0_i32_0 = arith.constant 0 : i32
    %c0_i32_1 = arith.constant 0 : i32
    return %c0_i32, %c0_i32_0 : i32, i32
  }
  func.func @transform_4(%arg0: i32) -> (i32, i32) {
    %c0_i32 = arith.constant 0 : i32
    %c0_i32_0 = arith.constant 0 : i32
    %c0_i32_1 = arith.constant 0 : i32
    return %c0_i32, %c0_i32_0 : i32, i32
  }
  func.func @transform_5(%arg0: i32) -> (i32, i32, i32, i32) {
    %c0_i32 = arith.constant 0 : i32
    %c0_i32_0 = arith.constant 0 : i32
    %c0_i32_1 = arith.constant 0 : i32
    %c0_i32_2 = arith.constant 0 : i32
    return %arg0, %c0_i32, %c0_i32_0, %c0_i32_1 : i32, i32, i32, i32
  }
}

</mosaic_0001>

<bundles_post_ra>
// kernel: _lambda_.3
= control target key start
LH: loop header
LB: loop body
LE: loop exit
PB: predicated region body
PF: predicated region fallthrough
CT: control target
= control target key end

     0   :  { %vm49_vm0 = vcmask 261120   ;;  %s178_s1 = inlined_call_operand.vmem [shape: bf16[32,128], index: 1, kind: input, shape index: {}]   ;;  %s179_s0 = inlined_call_operand.vmem [shape: bf16[24,32], index: 0, kind: input, shape index: {}]   ;;  %s180_s2 = inlined_call_operand.vmem [shape: f32[1,128], index: 2, kind: input, shape index: {}]   ;;  %s181_s3 = inlined_call_operand.vmem [shape: f32[24,128], index: 3, kind: output, shape index: {}]  }
   0x1   :  { %v130_v0 = vld [vmem:[%s178_s1] sm:$0xff]   ;;  %v131_v1 = vld [vmem:[%s178_s1 + $0x8] sm:$0xff]  }
   0x2   :  { %122 = vmatprep.subr.bf16.mxu0 %v130_v0  ;;  %v132_v2 = vld [vmem:[%s179_s0] sm:$0xff]   ;;  %v133_v3 = vld [vmem:[%s179_s0 + $0x8] ss:$0 sps:$4 sm:$0xff]  }
   0x3   :  { %123 = vmatpush3.bf16.msra.mxu0 %v130_v0  ;;  %126 = vmatprep.mubr.msk.bf16.mxu0 %vm49_vm0, %v132_v2  ;;  %v111_v4 = vld [vmem:[%s180_s2] ss:$0 sm:$0xff] }
   0x4   :  { %124 = vmatprep.subr.bf16.mxu0 %v131_v1 }
   0x7   :  { %125 = vmatpush3.bf16.msra.mxu0 %v131_v1 }
   0xa   :  { %127 = vmatmul.mubr.msk.bf16.vlgmr.msra.gmra.mrb[0].mxu0 %vm49_vm0, %v133_v3 }
  0xdd   :  { %v128_v5 = vpop.f32.mrb[0].mxu0 }
  0xde   :  { %v99_v6 = vadd.f32 %v128_v5, %v111_v4  ;;  %v90_v7 = vpop.f32.mrb[1].mxu0 }
  0xdf   :  { %v91_v8 = vadd.f32 %v111_v4, %v90_v7  ;;  %v129_v9 = vpop.f32.mrb[2].mxu0 }
  0xe0   :  { %106 = vst [vmem:[%s181_s3 + $0x10] sm:$0xff] %v99_v6  ;;  %v93_v10 = vpop.f32.mrb[3].mxu0 }
  0xe1   :  { %104 = vst [vmem:[%s181_s3] sm:$0xff] %v91_v8  ;;  %v94_v11 = vadd.f32 %v111_v4, %v93_v10 }
  0xe3   :  { %105 = vst [vmem:[%s181_s3 + $0x8] sm:$0xff] %v94_v11 }

// kernel: _lambda_.2
= control target key start
LH: loop header
LB: loop body
LE: loop exit
PB: predicated region body
PF: predicated region fallthrough
CT: control target
= control target key end

     0   :  { %s1203_s18 = smov 0   ;;  %s1384_s0 = inlined_call_operand.vmem [shape: f32[4,128], index: 0, kind: input, shape index: {}]   ;;  %s1385_s1 = inlined_call_operand.vmem [shape: bf16[32,128], index: 1, kind: input, shape index: {}]   ;;  %s1386_s2 = inlined_call_operand.vmem [shape: bf16[32,128], index: 2, kind: input, shape index: {}]   ;;  %s1387_s3 = inlined_call_operand.vmem [shape: bf16[32,128], index: 3, kind: input, shape index: {}]   ;;  %s1388_s4 = inlined_call_operand.vmem [shape: f32[1,128], index: 4, kind: input, shape index: {}]   ;;  %s1389_s5 = inlined_call_operand.vmem [shape: bf16[2,3,4,32], index: 5, kind: output, shape index: {}]  }
   0x1 LB: > { %s942_s19 = sadd.s32 4294967295, %s1164_s18   ;;  %p945_p0 = scmp.ge.s32.totalorder %s1164_s18, 1  ;;  %s1164_s18 = sphi %s1203_s18, %s15_s18  }
   0x2   : > { %p177_p1 = scmp.lt.s32.totalorder %s1164_s18, 3 }
   0x4   : > { %p178_p2 = pnand %p945_p0, %p177_p1 }
   0x5   : > { %p200_p3 = scmp.lt.s32.totalorder (!%p178_p2), %s942_s19, 1  ;;  %p947_p4 = scmp.ne.s32.totalorder (!%p178_p2), %s942_s19, 0 }
   0x6   : > { %181 = sbr.rel (%p178_p2) target bundleno = 2865 (0xb31), region = 40 }
   0xd   : > { %s201_s20 = scalar_select %p200_p3, %s942_s19, 1 }
   0xe   : > { %209 = sbr.rel (%p947_p4) target bundleno = 21 (0x15), region = 44  ;;  %vm210_vm0 = vcmask (!%p947_p4), 257024   ;;  %v1166_v0 = vmov (!%p947_p4), 0.0  }
   0xf   : > { %s1088_s21 = smul.u32 6, %s201_s20  ;;  %211 = vst.msk [vmem:[#allocation2] sm:$0xf] (!%p947_p4), %vm210_vm0, %v1166_v0  ;;  %212 = vst.msk [vmem:[#allocation3] sm:$0xf] (!%p947_p4), %vm210_vm0, %v1166_v0 }
  0x10   : > { %213 = vst.msk [vmem:[#allocation4] sm:$0xf] (!%p947_p4), %vm210_vm0, %v1166_v0  ;;  %214 = vst.msk [vmem:[#allocation5] sm:$0xf] (!%p947_p4), %vm210_vm0, %v1166_v0 }
  0x11   : > { %s1214_s24 = scalar_lea.vmem %s1389_s5, %s1088_s21 }
  0x15 PF: > { %v1219_v1 = vld [vmem:[%s1385_s1] sm:$0xff]   ;;  %v1167_v2 = vmov 0.0   ;;  %v1227_v3 = vld [vmem:[%s1385_s1 + $0x8] sm:$0xff]   ;;  %vm1168_vm1 = vmmov 0   ;;  %vm252_vm2 = vcmask 261120   ;;  %s1169_s6 = smov 64  }
  0x16   : > { %1001 = vmatprep.subr.bf16.mxu0 %v1167_v2  ;;  %1009 = vmatprep.subr.bf16.mxu1 %v1167_v2  ;;  %v235_v4 = vld [vmem:[#allocation2] sm:$0xf]  ;;  %v236_v13 = vld [vmem:[#allocation3] sm:$0xf]  ;;  %s1170_s7 = smov 32   ;;  %v1264_v25 = vld [vmem:[%s1386_s2 + $0x8] sm:$0xff]  }
  0x17   : > { %1002 = vmatpush3.bf16.msra.mxu0 %v1219_v1  ;;  %1005 = vmatprep.mubr.msk.bf16.mxu0 %vm1168_vm1, %v1167_v2  ;;  %v239_v5 = vpack.c.bf16 %v235_v4, %v235_v4  ;;  %v1246_v6 = vld [vmem:[%s1384_s0] sm:$0xf]  ;;  %v1282_v32 = vld [vmem:[%s1387_s3 + $0x8] sm:$0xff]   ;;  %s1172_s19 = smov 96   ;;  %vm482_vm3 = vcmask 254976   ;;  %vm882_vm4 = vcmask 257024  }
  0x18   : > { %1003 = vmatprep.subr.bf16.mxu0 %v1167_v2  ;;  %1013 = vmatprep.mubr.msk.bf16.mxu1 %vm1168_vm1, %v1167_v2  ;;  %v1258_v24 = vld [vmem:[%s1386_s2] sm:$0xff]   ;;  %v237_v33 = vld [vmem:[#allocation4] sm:$0xf]  ;;  %v238_v48 = vld [vmem:[#allocation5] sm:$0xf] }
  0x19   : > { %1010 = vmatpush3.bf16.msra.mxu1 %v1258_v24  ;;  %v1274_v30 = vld [vmem:[%s1387_s3] sm:$0xff]   ;;  %v385_v34 = vpack.c.bf16 %v237_v33, %v237_v33 }
  0x1a   : > { %1011 = vmatprep.subr.bf16.mxu1 %v1167_v2  ;;  %v1306_v40 = vld [vmem:[%s1388_s4] ss:$0 sm:$0xff] }
  0x1b   : > { %1004 = vmatpush3.bf16.msra.mxu0 %v1227_v3 }
  0x1c   : > { %1025 = vmatprep.subr.bf16.mxu0 %v1167_v2 }
  0x1d   : > { %1012 = vmatpush3.bf16.msra.mxu1 %v1264_v25 }
  0x1e   : > { %1006 = vmatmul.mubr.msk.bf16.vlgmr.msra.gmra.mrb[0].mxu0 %vm252_vm2, %v239_v5  ;;  %1017 = vmatprep.subr.bf16.mxu1 %v1167_v2 }
  0x1f   : > { %1026 = vmatpush3.bf16.msra.mxu0 %v1219_v1  ;;  %1029 = vmatprep.mubr.msk.bf16.mxu0 %vm1168_vm1, %v1167_v2 }
  0x20   : > { %1027 = vmatprep.subr.bf16.mxu0 %v1167_v2 }
  0x23   : > { %1028 = vmatpush3.bf16.msra.mxu0 %v1227_v3 }
  0x24   : > { %1033 = vmatprep.subr.bf16.mxu0 %v1167_v2 }
  0xf1   : > { %v290_v7 = vpop.f32.mrb[0].mxu0 }
  0xf2   : > { %v296_v8 = vadd.f32 %v290_v7, %v1246_v6  ;;  %v1007_v9 = vpop.f32.mrb[1].mxu0 }
  0xf3   : > { %v293_v10 = vpop.f32.mrb[2].mxu0 }
  0xf4   : > { %1110 = vtanh.f32 %v296_v8  ;;  %v1008_v11 = vpop.f32.mrb[3].mxu0  ;;  %v952_v14 = vmul.f32 -1.442695, %v296_v8 }
  0xf6   : > { %1112 = vpow2.f32 %v952_v14 }
  0xfe   : > { %v1111_v12 = vpop.eup %1110 }
  0xff   : > { %310 = vrot.lane.b32.xlu0 %v1111_v12, %s1169_s6 }
 0x100   : > { %v1113_v15 = vpop.eup %1112 }
 0x101   : > { %v300_v16 = vadd.f32 1.0, %v1113_v15 }
 0x103   : > { %305 = vrot.lane.b32.xlu0 %v236_v13, %s1170_s7  ;;  %1114 = vrcp.f32 %v300_v16 }
 0x10d   : > { %v1115_v17 = vpop.eup %1114 }
 0x171   : > { %v311_v18 = vpop.permute.xlu0 %310 }
 0x172   : > { %v313_v19 = vmul.f32 %v1115_v17, %v311_v18 }
 0x174   : > { %315 = vrot.lane.b32.xlu1 %v313_v19, %s1170_s7 }
 0x175   : > { %v306_v20 = vpop.permute.xlu0 %305 }
 0x176   : > { %v308_v21 = vmul.f32 %v1115_v17, %v306_v20 }
 0x1e6   : > { %v316_v22 = vpop.permute.xlu1 %315 }
 0x1e7   : > { %v1252_v23 = vadd.f32 %v316_v22, %v308_v21 }
 0x1e9   : > { %1116 = vtanh.f32 %v1252_v23 }
 0x1f3   : > { %v1117_v26 = vpop.eup %1116 }
 0x1f4   : > { %321 = vrot.lane.b32.xlu1 %v1117_v26, %s1169_s6 }
 0x266   : > { %v322_v27 = vpop.permute.xlu1 %321 }
 0x267   : > { %v324_v28 = vmul.f32 %v1115_v17, %v322_v27 }
 0x269   : > { %v325_v29 = vpack.c.bf16 %v324_v28, %v324_v28 }
 0x26b   : > { %327 = vrot.lane.b32.xlu0 %v325_v29, %s1170_s7 }
 0x2dd   : > { %v328_v31 = vpop.permute.xlu0 %327 }
 0x2de   : > { %1014 = vmatmul.mubr.msk.bf16.vlgmr.msra.gmra.mrb[0].mxu1 %vm252_vm2, %v328_v31  ;;  %1030 = vmatmul.mubr.msk.bf16.vlgmr.msra.gmra.mrb[4].mxu0 %vm252_vm2, %v328_v31 }
 0x2df   : > { %1018 = vmatpush3.bf16.msra.mxu1 %v1274_v30  ;;  %1021 = vmatprep.mubr.msk.bf16.mxu1 %vm1168_vm1, %v1167_v2 }
 0x2e0   : > { %1019 = vmatprep.subr.bf16.mxu1 %v1167_v2  ;;  %1034 = vmatpush3.bf16.msra.mxu0 %v1258_v24 }
 0x2e1   : > { %1035 = vmatprep.subr.bf16.mxu0 %v1167_v2  ;;  %1037 = vmatprep.mubr.msk.bf16.mxu0 %vm1168_vm1, %v1167_v2 }
 0x2e3   : > { %1020 = vmatpush3.bf16.msra.mxu1 %v1282_v32 }
 0x2e4   : > { %1049 = vmatprep.subr.bf16.mxu1 %v1167_v2  ;;  %1036 = vmatpush3.bf16.msra.mxu0 %v1264_v25 }
 0x2e5   : > { %1041 = vmatprep.subr.bf16.mxu0 %v1167_v2 }
 0x2ea   : > { %1022 = vmatmul.mubr.msk.bf16.vlgmr.msra.gmra.mrb[0].mxu1 %vm252_vm2, %v385_v34 }
 0x2eb   : > { %1050 = vmatpush3.bf16.msra.mxu1 %v1219_v1  ;;  %1053 = vmatprep.mubr.msk.bf16.mxu1 %vm1168_vm1, %v1167_v2 }
 0x2ec   : > { %1051 = vmatprep.subr.bf16.mxu1 %v1167_v2 }
 0x2ef   : > { %1052 = vmatpush3.bf16.msra.mxu1 %v1227_v3 }
 0x2f0   : > { %1057 = vmatprep.subr.bf16.mxu1 %v1167_v2 }
 0x3b1   : > { %v518_v35 = vpop.f32.mrb[4].mxu0 }
 0x3b2   : > { %v524_v36 = vadd.f32 %v518_v35, %v1246_v6  ;;  %v1031_v37 = vpop.f32.mrb[5].mxu0 }
 0x3b3   : > { %v521_v38 = vpop.f32.mrb[6].mxu0 }
 0x3b4   : > { %1118 = vtanh.f32 %v524_v36  ;;  %v1032_v39 = vpop.f32.mrb[7].mxu0  ;;  %v961_v49 = vmul.f32 -1.442695, %v524_v36 }
 0x3bd   : > { %v435_v41 = vpop.f32.mrb[0].mxu1 }
 0x3be   : > { %v1119_v42 = vpop.eup %1118  ;;  %v1073_v43 = vadd.f32 %v1306_v40, %v435_v41  ;;  %v1023_v44 = vpop.f32.mrb[1].mxu1 }
 0x3bf   : > { %534 = vrot.lane.b32.xlu1 %v1119_v42, %s1169_s6  ;;  %v438_v45 = vpop.f32.mrb[2].mxu1 }
 0x3c0   : > { %1120 = vtanh.f32 %v1073_v43  ;;  %v1024_v46 = vpop.f32.mrb[3].mxu1  ;;  %v959_v50 = vmul.f32 -1.442695, %v1073_v43 }
 0x3c1   : > { %1122 = vpow2.f32 %v961_v49 }
 0x3c2   : > { %1124 = vpow2.f32 %v959_v50 }
 0x3ca   : > { %v1121_v47 = vpop.eup %1120 }
 0x3cb   : > { %455 = vrot.lane.b32.xlu0 %v1121_v47, %s1169_s6  ;;  %v1123_v51 = vpop.eup %1122 }
 0x3cc   : > { %v528_v52 = vadd.f32 1.0, %v1123_v51  ;;  %v1125_v53 = vpop.eup %1124 }
 0x3cd   : > { %v445_v54 = vadd.f32 1.0, %v1125_v53 }
 0x3ce   : > { %1126 = vrcp.f32 %v528_v52 }
 0x3cf   : > { %450 = vrot.lane.b32.xlu0 %v238_v48, %s1170_s7  ;;  %1128 = vrcp.f32 %v445_v54 }
 0x3d8   : > { %v1127_v55 = vpop.eup %1126 }
 0x3d9   : > { %v1129_v58 = vpop.eup %1128  ;;  %v532_v61 = vmul.f32 %v1127_v55, %v1252_v23 }
 0x431   : > { %v535_v56 = vpop.permute.xlu1 %534 }
 0x432   : > { %v537_v57 = vmul.f32 %v1127_v55, %v535_v56 }
 0x434   : > { %539 = vrot.lane.b32.xlu1 %v537_v57, %s1170_s7 }
 0x43d   : > { %v456_v59 = vpop.permute.xlu0 %455 }
 0x43e   : > { %v458_v60 = vmul.f32 %v1129_v58, %v456_v59 }
 0x440   : > { %460 = vrot.lane.b32.xlu1 %v458_v60, %s1170_s7 }
 0x441   : > { %v451_v0 = vpop.permute.xlu0 %450 }
 0x442   : > { %v453_v1 = vmul.f32 %v1129_v58, %v451_v0 }
 0x4a6   : > { %v540_v62 = vpop.permute.xlu1 %539 }
 0x4a7   : > { %v1315_v63 = vadd.f32 %v540_v62, %v532_v61 }
 0x4a9   : > { %1130 = vtanh.f32 %v1315_v63 }
 0x4b2   : > { %v461_v3 = vpop.permute.xlu1 %460 }
 0x4b3   : > { %v1131_v4 = vpop.eup %1130  ;;  %v1318_v5 = vadd.f32 %v461_v3, %v453_v1  ;;  %v475_v3 = vlaneseq }
 0x4b4   : > { %545 = vrot.lane.b32.xlu0 %v1131_v4, %s1169_s6 }
 0x4b5   : > { %1132 = vtanh.f32 %v1318_v5 }
 0x4bf   : > { %v1133_v7 = vpop.eup %1132 }
 0x4c0   : > { %466 = vrot.lane.b32.xlu1 %v1133_v7, %s1169_s6 }
 0x526   : > { %v546_v8 = vpop.permute.xlu0 %545 }
 0x527   : > { %v548_v9 = vmul.f32 %v1127_v55, %v546_v8 }
 0x529   : > { %v549_v10 = vpack.c.bf16 %v548_v9, %v548_v9 }
 0x52b   : > { %551 = vrot.lane.b32.xlu0 %v549_v10, %s1170_s7 }
 0x532   : > { %v467_v11 = vpop.permute.xlu1 %466 }
 0x533   : > { %v469_v12 = vmul.f32 %v1129_v58, %v467_v11 }
 0x535   : > { %v1324_v13 = vpack.c.bf16 %v469_v12, %v469_v12 }
 0x537   : > { %597 = vrot.lane.b32.xlu1 %v1324_v13, %s1170_s7 }
 0x59d   : > { %v552_v14 = vpop.permute.xlu0 %551 }
 0x59e   : > { %1038 = vmatmul.mubr.msk.bf16.vlgmr.msra.gmra.mrb[8].mxu0 %vm252_vm2, %v552_v14  ;;  %1054 = vmatmul.mubr.msk.bf16.vlgmr.msra.gmra.mrb[4].mxu1 %vm252_vm2, %v552_v14 }
 0x59f   : > { %1042 = vmatpush3.bf16.msra.mxu0 %v1274_v30  ;;  %1045 = vmatprep.mubr.msk.bf16.mxu0 %vm1168_vm1, %v1167_v2 }
 0x5a0   : > { %1043 = vmatprep.subr.bf16.mxu0 %v1167_v2  ;;  %1058 = vmatpush3.bf16.msra.mxu1 %v1258_v24 }
 0x5a1   : > { %1059 = vmatprep.subr.bf16.mxu1 %v1167_v2  ;;  %1061 = vmatprep.mubr.msk.bf16.mxu1 %vm1168_vm1, %v1167_v2 }
 0x5a3   : > { %1044 = vmatpush3.bf16.msra.mxu0 %v1282_v32 }
 0x5a4   : > { %1060 = vmatpush3.bf16.msra.mxu1 %v1264_v25 }
 0x5a5   : > { %1065 = vmatprep.subr.bf16.mxu1 %v1167_v2 }
 0x5a9   : > { %v598_v15 = vpop.permute.xlu1 %597 }
 0x5aa   : > { %1046 = vmatmul.mubr.msk.bf16.vlgmr.msra.gmra.mrb[8].mxu0 %vm252_vm2, %v598_v15 }
 0x671   : > { %v715_v16 = vpop.f32.mrb[4].mxu1 }
 0x672   : > { %v721_v17 = vadd.f32 %v715_v16, %v1246_v6  ;;  %v1055_v18 = vpop.f32.mrb[5].mxu1 }
 0x673   : > { %v718_v19 = vpop.f32.mrb[6].mxu1 }
 0x674   : > { %1134 = vtanh.f32 %v721_v17  ;;  %v1056_v20 = vpop.f32.mrb[7].mxu1  ;;  %v967_v28 = vmul.f32 -1.442695, %v721_v17 }
 0x67d   : > { %v636_v21 = vpop.f32.mrb[8].mxu0 }
 0x67e   : > { %v1135_v22 = vpop.eup %1134  ;;  %v1074_v23 = vadd.f32 %v1306_v40, %v636_v21  ;;  %v1047_v24 = vpop.f32.mrb[9].mxu0 }
 0x67f   : > { %v639_v26 = vpop.f32.mrb[10].mxu0  ;;  %731 = vrot.lane.b32.xlu0 %v1135_v22, %s1169_s6 }
 0x680   : > { %1136 = vtanh.f32 %v1074_v23  ;;  %v1048_v25 = vpop.f32.mrb[11].mxu0  ;;  %v964_v6 = vmul.f32 -1.442695, %v1074_v23 }
 0x681   : > { %1138 = vpow2.f32 %v967_v28 }
 0x682   : > { %1140 = vpow2.f32 %v964_v6 }
 0x68a   : > { %v1137_v27 = vpop.eup %1136 }
 0x68b   : > { %652 = vrot.lane.b32.xlu1 %v1137_v27, %s1169_s6  ;;  %v1139_v29 = vpop.eup %1138 }
 0x68c   : > { %v725_v31 = vadd.f32 1.0, %v1139_v29  ;;  %v1141_v33 = vpop.eup %1140 }
 0x68d   : > { %v646_v34 = vadd.f32 1.0, %v1141_v33 }
 0x68e   : > { %1142 = vrcp.f32 %v725_v31 }
 0x68f   : > { %1144 = vrcp.f32 %v646_v34 }
 0x698   : > { %v1143_v35 = vpop.eup %1142 }
 0x699   : > { %v1145_v38 = vpop.eup %1144  ;;  %v729_v42 = vmul.f32 %v1143_v35, %v1315_v63 }
 0x69a   : > { %v650_v45 = vmul.f32 %v1145_v38, %v1318_v5  ;;  %v476_v5 = vshrl.u32 %v475_v3, 7 }
 0x6f1   : > { %v732_v36 = vpop.permute.xlu0 %731 }
 0x6f2   : > { %v734_v37 = vmul.f32 %v1143_v35, %v732_v36 }
 0x6f4   : > { %736 = vrot.lane.b32.xlu0 %v734_v37, %s1170_s7 }
 0x6fd   : > { %v653_v39 = vpop.permute.xlu1 %652 }
 0x6fe   : > { %v655_v41 = vmul.f32 %v1145_v38, %v653_v39 }
 0x700   : > { %657 = vrot.lane.b32.xlu1 %v655_v41, %s1170_s7 }
 0x766   : > { %v737_v43 = vpop.permute.xlu0 %736 }
 0x767   : > { %v739_v44 = vadd.f32 %v737_v43, %v729_v42 }
 0x769   : > { %1146 = vtanh.f32 %v739_v44 }
 0x772   : > { %v658_v46 = vpop.permute.xlu1 %657 }
 0x773   : > { %v1147_v47 = vpop.eup %1146  ;;  %v660_v48 = vadd.f32 %v658_v46, %v650_v45 }
 0x774   : > { %742 = vrot.lane.b32.xlu0 %v1147_v47, %s1169_s6 }
 0x775   : > { %1148 = vtanh.f32 %v660_v48 }
 0x77f   : > { %v1149_v49 = vpop.eup %1148 }
 0x780   : > { %663 = vrot.lane.b32.xlu1 %v1149_v49, %s1169_s6 }
 0x7e6   : > { %v743_v50 = vpop.permute.xlu0 %742 }
 0x7e7   : > { %v745_v51 = vmul.f32 %v1143_v35, %v743_v50 }
 0x7e9   : > { %v746_v52 = vpack.c.bf16 %v745_v51, %v745_v51 }
 0x7eb   : > { %748 = vrot.lane.b32.xlu0 %v746_v52, %s1170_s7 }
 0x7f2   : > { %v664_v53 = vpop.permute.xlu1 %663 }
 0x7f3   : > { %v666_v54 = vmul.f32 %v1145_v38, %v664_v53 }
 0x7f5   : > { %v667_v55 = vpack.c.bf16 %v666_v54, %v666_v54 }
 0x7f7   : > { %794 = vrot.lane.b32.xlu1 %v667_v55, %s1170_s7 }
 0x85d   : > { %v749_v56 = vpop.permute.xlu0 %748 }
 0x85e   : > { %1062 = vmatmul.mubr.msk.bf16.vlgmr.msra.gmra.mrb[8].mxu1 %vm252_vm2, %v749_v56 }
 0x85f   : > { %1066 = vmatpush3.bf16.msra.mxu1 %v1274_v30  ;;  %1069 = vmatprep.mubr.msk.bf16.mxu1 %vm1168_vm1, %v1167_v2 }
 0x860   : > { %1067 = vmatprep.subr.bf16.mxu1 %v1167_v2  ;;  %v1171_v2 = vmov 1983009808  }
 0x863   : > { %1068 = vmatpush3.bf16.msra.mxu1 %v1282_v32  ;;  %v473_v32 = vunpack.c.l.s4 %v1171_v2 }
 0x865   : > { %v474_v4 = vunpack.c.0.s8 %v473_v32 }
 0x867   : > { %v477_v8 = vsub.s32 %v474_v4, %v476_v5 }
 0x869   : > { %v795_v57 = vpop.permute.xlu1 %794  ;;  %v478_v10 = vrot.slane %v1324_v13, %v477_v8  ;;  %v675_v13 = vrot.slane %v667_v55, %v477_v8 }
 0x86a   : > { %1070 = vmatmul.mubr.msk.bf16.vlgmr.msra.gmra.mrb[8].mxu1 %vm252_vm2, %v795_v57 }
 0x93d   : > { %v833_v58 = vpop.f32.mrb[8].mxu1 }
 0x93e   : > { %v1075_v59 = vadd.f32 %v1306_v40, %v833_v58  ;;  %v1071_v60 = vpop.f32.mrb[9].mxu1 }
 0x93f   : > { %v836_v61 = vpop.f32.mrb[10].mxu1 }
 0x940   : > { %1150 = vtanh.f32 %v1075_v59  ;;  %v1072_v62 = vpop.f32.mrb[11].mxu1  ;;  %v970_v30 = vmul.f32 -1.442695, %v1075_v59 }
 0x942   : > { %1152 = vpow2.f32 %v970_v30 }
 0x94a   : > { %v1151_v63 = vpop.eup %1150 }
 0x94b   : > { %849 = vrot.lane.b32.xlu0 %v1151_v63, %s1169_s6 }
 0x94c   : > { %v1153_v0 = vpop.eup %1152 }
 0x94d   : > { %v843_v1 = vadd.f32 1.0, %v1153_v0 }
 0x94f   : > { %1154 = vrcp.f32 %v843_v1 }
 0x959   : > { %v1155_v7 = vpop.eup %1154 }
 0x95a   : > { %v847_v11 = vmul.f32 %v1155_v7, %v660_v48 }
 0x9bd   : > { %v850_v40 = vpop.permute.xlu0 %849 }
 0x9be   : > { %v852_v9 = vmul.f32 %v1155_v7, %v850_v40 }
 0x9c0   : > { %854 = vrot.lane.b32.xlu1 %v852_v9, %s1170_s7 }
 0x9c4   : > { %479 = vrot.lane.b32.xlu1 %v478_v10, %s1170_s7 }
 0x9c8   : > { %885 = vrot.lane.b32.xlu1 %v739_v44, %s1172_s19 }
 0xa32   : > { %v855_v12 = vpop.permute.xlu1 %854 }
 0xa33   : > { %v857_v14 = vadd.f32 %v855_v12, %v847_v11 }
 0xa35   : > { %1156 = vtanh.f32 %v857_v14 }
 0xa36   : > { %v480_v15 = vpop.permute.xlu1 %479 }
 0xa37   : > { %483 = vst.msk [vmem:[%s1214_s24] sm:$0x3] %vm482_vm3, %v480_v15 }
 0xa3a   : > { %v886_v16 = vpop.permute.xlu1 %885 }
 0xa3b   : > { %888 = vst.msk [vmem:[#allocation3] sm:$0xf] %vm882_vm4, %v886_v16 }
 0xa3f   : > { %v1157_v17 = vpop.eup %1156 }
 0xa40   : > { %860 = vrot.lane.b32.xlu0 %v1157_v17, %s1169_s6 }
 0xa44   : > { %676 = vrot.lane.b32.xlu0 %v675_v13, %s1170_s7 }
 0xa48   : > { %879 = vrot.lane.b32.xlu0 %v745_v51, %s1170_s7 }
 0xab2   : > { %v861_v18 = vpop.permute.xlu0 %860 }
 0xab3   : > { %v863_v19 = vmul.f32 %v1155_v7, %v861_v18 }
 0xab5   : > { %v864_v20 = vpack.c.bf16 %v863_v19, %v863_v19  ;;  %890 = vrot.lane.b32.xlu0 %v863_v19, %s1170_s7 }
 0xab6   : > { %v677_v21 = vpop.permute.xlu0 %676 }
 0xab7   : > { %965 = vst.msk [vmem:[%s1214_s24 + $0x2] sm:$0x3] %vm482_vm3, %v677_v21  ;;  %v872_v22 = vrot.slane %v864_v20, %v477_v8 }
 0xab9   : > { %873 = vrot.lane.b32.xlu1 %v872_v22, %s1170_s7 }
 0xaba   : > { %v880_v23 = vpop.permute.xlu0 %879 }
 0xabb   : > { %883 = vst.msk [vmem:[#allocation2] sm:$0xf] %vm882_vm4, %v880_v23 }
 0xabd   : > { %895 = vrot.lane.b32.xlu1 %v857_v14, %s1172_s19 }
 0xb27   : > { %v891_v24 = vpop.permute.xlu0 %890 }
 0xb28   : > { %893 = vst.msk [vmem:[#allocation4] sm:$0xf] %vm882_vm4, %v891_v24 }
 0xb2b   : > { %v874_v26 = vpop.permute.xlu1 %873 }
 0xb2c   : > { %971 = vst.msk [vmem:[%s1214_s24 + $0x4] sm:$0x3] %vm482_vm3, %v874_v26 }
 0xb2f   : > { %v896_v25 = vpop.permute.xlu1 %895 }
 0xb30   : > { %898 = vst.msk [vmem:[#allocation5] sm:$0xf] %vm882_vm4, %v896_v25 }
 0xb31 PF: > { %s15_s18 = sadd.s32 1, %s1164_s18  }
 0xb32   : > { %p12_p5 = scmp.ge.s32.totalorder %s15_s18, 4  }
 0xb34   :  { %14 = sbr.rel (!%p12_p5) target bundleno = 1 (0x1), region = 73 }

</bundles_post_ra>
